<compile_context>
chip_gen: v5e
topology: v5e:2x2
jax: 0.10.0
libtpu: 0.0.40
codegen_flags: <defaults>
</compile_context>

<pallas_src>
import jax
import jax.numpy as jnp
from jax import lax
from jax.experimental import pallas as pl
from jax.experimental.pallas import tpu as pltpu

# ----- "args" constants (small, deterministic, consistent with the module) -----
SEQ_LEN = 8
BATCH = 2
INPUT_SIZE = 16
HIDDEN = 32
NUM_LAYERS = 2          # fused kernel signature below is written for 2 layers
OUTPUT_CLASS = 10
MAG = 5.0
INI_IN2HID = 0.001
BN_EPS = 1e-5

U_BOUND = MAG ** (1.0 / SEQ_LEN)
U_LOWBOUND = (1.0 / MAG) ** (1.0 / SEQ_LEN)


# ------------------------- fused network kernel -------------------------
def _indrnn_layer(x_ts, w, b, u, gamma, beta):
    """One [dense -> IndRNN -> BN] layer on register-resident per-timestep values.

    x_ts: list of SEQ_LEN values, each (BATCH, Din).  Returns list of (BATCH, H).
    """
    B, H = BATCH, HIDDEN

    # Hoisted broadcasts (JAX does not CSE broadcast_in_dim inside unrolled loops).
    b_b = jnp.broadcast_to(b, (B, H))
    u_b = jnp.broadcast_to(u, (B, H))

    # (1)+(2) dense projection + fully-unrolled IndRNN recurrence, h_0 = 0.
    h_prev = jnp.zeros((B, H), jnp.float32)
    hs = []
    for t in range(SEQ_LEN):
        pre_t = jnp.dot(x_ts[t], w, preferred_element_type=jnp.float32) + b_b
        h_prev = jnp.maximum(pre_t + u_b * h_prev, 0.0)
        hs.append(h_prev)

    # (3) Batch_norm_overtime: training-mode stats over (time, batch) per channel.
    n = float(SEQ_LEN * B)
    s = hs[0]
    for t in range(1, SEQ_LEN):
        s = s + hs[t]
    mean = jnp.sum(s, axis=0, keepdims=True) / n                    # (1, H)
    mean_b = jnp.broadcast_to(mean, (B, H))
    sq = (hs[0] - mean_b) ** 2
    for t in range(1, SEQ_LEN):
        sq = sq + (hs[t] - mean_b) ** 2
    var = jnp.sum(sq, axis=0, keepdims=True) / n                    # (1, H), biased
    scale = lax.rsqrt(var + BN_EPS) * gamma                         # (1, H)
    shift = beta - mean * scale                                     # (1, H)
    scale_b = jnp.broadcast_to(scale, (B, H))
    shift_b = jnp.broadcast_to(shift, (B, H))
    return [h * scale_b + shift_b for h in hs]


def fused_net_kernel(x_ref, w0_ref, w1_ref, vecs_ref, wfc_ref, bfc_ref, o_ref):
    w_refs = (w0_ref, w1_ref)                         # NUM_LAYERS == 2

    # Per-timestep input slices: tiny VMEM loads, everything after is registers.
    acts = [x_ref[t] for t in range(SEQ_LEN)]         # each (BATCH, INPUT_SIZE)

    for layer in range(NUM_LAYERS):
        w = w_refs[layer][...]                        # (Din_l, H), loaded once
        base = 4 * layer
        b     = vecs_ref[pl.ds(base + 0, 1), :]       # (1, H)
        u     = vecs_ref[pl.ds(base + 1, 1), :]
        gamma = vecs_ref[pl.ds(base + 2, 1), :]
        beta  = vecs_ref[pl.ds(base + 3, 1), :]
        acts = _indrnn_layer(acts, w, b, u, gamma, beta)

    # Final classifier on the last timestep; single output store.
    o_ref[...] = (
        jnp.dot(acts[-1], wfc_ref[...], preferred_element_type=jnp.float32)
        + bfc_ref[...]
    )


# ------------------------- wrapper -------------------------
@jax.jit
def stacked_indrnn_encoder(x, w0, w1, vecs, w_fc, b_fc):
    # TODO(synk): dropout_overtime is skipped (args.dropout assumed 0 / eval mode).
    _, B, _ = x.shape
    vmem = lambda: pl.BlockSpec(memory_space=pltpu.MemorySpace.VMEM)
    return pl.pallas_call(
        fused_net_kernel,
        out_shape=jax.ShapeDtypeStruct((B, OUTPUT_CLASS), jnp.float32),
        in_specs=[vmem() for _ in range(6)],
        out_specs=vmem(),
    )(x, w0, w1, vecs, w_fc, b_fc)


# ------------------------- parameters (deterministic, mimics init_weights) -----
def init_params(key):
    ws = []
    vec_rows = []
    for layer in range(NUM_LAYERS):
        din = INPUT_SIZE if layer == 0 else HIDDEN
        key, kw, ku = jax.random.split(key, 3)
        # DIs weight ~ U(-ini_in2hid, ini_in2hid); bias = 0
        w = jax.random.uniform(kw, (din, HIDDEN), jnp.float32, -INI_IN2HID, INI_IN2HID)
        # weight_hh ~ U(0, U_bound); last layer ~ U(U_lowbound, U_bound)
        lo = U_LOWBOUND if layer == NUM_LAYERS - 1 else 0.0
        u = jax.random.uniform(ku, (HIDDEN,), jnp.float32, lo, U_BOUND)
        b = jnp.zeros((HIDDEN,), jnp.float32)
        gamma = jnp.ones((HIDDEN,), jnp.float32)      # BN affine defaults
        beta = jnp.zeros((HIDDEN,), jnp.float32)
        ws.append(w)
        vec_rows += [b, u, gamma, beta]
    vecs = jnp.stack(vec_rows, axis=0)                # (4*NUM_LAYERS, HIDDEN)
    key, kw = jax.random.split(key)
    bound = 1.0 / (HIDDEN ** 0.5)
    w_fc = jax.random.uniform(kw, (HIDDEN, OUTPUT_CLASS), jnp.float32, -bound, bound)
    b_fc = jnp.zeros((1, OUTPUT_CLASS), jnp.float32)  # 'bias' -> 0
    return ws, vecs, w_fc, b_fc


if __name__ == "__main__":
    key = jax.random.PRNGKey(0)
    kx, kp = jax.random.split(key)
    x = jax.random.normal(kx, (SEQ_LEN, BATCH, INPUT_SIZE), jnp.float32)
    (w0, w1), vecs, w_fc, b_fc = init_params(kp)

    out = stacked_indrnn_encoder(x, w0, w1, vecs, w_fc, b_fc)
    jax.block_until_ready(out)
    assert out.shape == (BATCH, OUTPUT_CLASS), out.shape
    assert out.dtype == jnp.float32
    print("KERNEL_OK")
</pallas_src>

<mosaic_0001>
module attributes {stable_mosaic.version = 11 : i64} {
  func.func @fused_net_kernel(%arg0: memref<8x2x16xf32, #tpu.memory_space<vmem>>, %arg1: memref<16x32xf32, #tpu.memory_space<vmem>>, %arg2: memref<32x32xf32, #tpu.memory_space<vmem>>, %arg3: memref<8x32xf32, #tpu.memory_space<vmem>>, %arg4: memref<32x10xf32, #tpu.memory_space<vmem>>, %arg5: memref<1x10xf32, #tpu.memory_space<vmem>>, %arg6: memref<2x10xf32, #tpu.memory_space<vmem>>) attributes {dimension_semantics = [], scalar_prefetch = 0 : i64, scratch_operands = 0 : i64, tpu.core_type = #tpu.core_type<tc>} {
    %c0 = arith.constant 0 : index
    %c0_0 = arith.constant 0 : index
    %c0_1 = arith.constant 0 : index
    %0 = vector.load %arg0[%c0, %c0_0, %c0_1] : memref<8x2x16xf32, #tpu.memory_space<vmem>>, vector<1x2x16xf32>
    %1 = vector.shape_cast %0 : vector<1x2x16xf32> to vector<2x16xf32>
    %c1 = arith.constant 1 : index
    %c0_2 = arith.constant 0 : index
    %c0_3 = arith.constant 0 : index
    %2 = vector.load %arg0[%c1, %c0_2, %c0_3] : memref<8x2x16xf32, #tpu.memory_space<vmem>>, vector<1x2x16xf32>
    %3 = vector.shape_cast %2 : vector<1x2x16xf32> to vector<2x16xf32>
    %c2 = arith.constant 2 : index
    %c0_4 = arith.constant 0 : index
    %c0_5 = arith.constant 0 : index
    %4 = vector.load %arg0[%c2, %c0_4, %c0_5] : memref<8x2x16xf32, #tpu.memory_space<vmem>>, vector<1x2x16xf32>
    %5 = vector.shape_cast %4 : vector<1x2x16xf32> to vector<2x16xf32>
    %c3 = arith.constant 3 : index
    %c0_6 = arith.constant 0 : index
    %c0_7 = arith.constant 0 : index
    %6 = vector.load %arg0[%c3, %c0_6, %c0_7] : memref<8x2x16xf32, #tpu.memory_space<vmem>>, vector<1x2x16xf32>
    %7 = vector.shape_cast %6 : vector<1x2x16xf32> to vector<2x16xf32>
    %c4 = arith.constant 4 : index
    %c0_8 = arith.constant 0 : index
    %c0_9 = arith.constant 0 : index
    %8 = vector.load %arg0[%c4, %c0_8, %c0_9] : memref<8x2x16xf32, #tpu.memory_space<vmem>>, vector<1x2x16xf32>
    %9 = vector.shape_cast %8 : vector<1x2x16xf32> to vector<2x16xf32>
    %c5 = arith.constant 5 : index
    %c0_10 = arith.constant 0 : index
    %c0_11 = arith.constant 0 : index
    %10 = vector.load %arg0[%c5, %c0_10, %c0_11] : memref<8x2x16xf32, #tpu.memory_space<vmem>>, vector<1x2x16xf32>
    %11 = vector.shape_cast %10 : vector<1x2x16xf32> to vector<2x16xf32>
    %c6 = arith.constant 6 : index
    %c0_12 = arith.constant 0 : index
    %c0_13 = arith.constant 0 : index
    %12 = vector.load %arg0[%c6, %c0_12, %c0_13] : memref<8x2x16xf32, #tpu.memory_space<vmem>>, vector<1x2x16xf32>
    %13 = vector.shape_cast %12 : vector<1x2x16xf32> to vector<2x16xf32>
    %c7 = arith.constant 7 : index
    %c0_14 = arith.constant 0 : index
    %c0_15 = arith.constant 0 : index
    %14 = vector.load %arg0[%c7, %c0_14, %c0_15] : memref<8x2x16xf32, #tpu.memory_space<vmem>>, vector<1x2x16xf32>
    %15 = vector.shape_cast %14 : vector<1x2x16xf32> to vector<2x16xf32>
    %c0_16 = arith.constant 0 : index
    %c0_17 = arith.constant 0 : index
    %16 = vector.load %arg1[%c0_16, %c0_17] : memref<16x32xf32, #tpu.memory_space<vmem>>, vector<16x32xf32>
    %c0_18 = arith.constant 0 : index
    %c0_19 = arith.constant 0 : index
    %17 = vector.load %arg3[%c0_18, %c0_19] : memref<8x32xf32, #tpu.memory_space<vmem>>, vector<1x32xf32>
    %c1_20 = arith.constant 1 : index
    %c0_21 = arith.constant 0 : index
    %18 = vector.load %arg3[%c1_20, %c0_21] : memref<8x32xf32, #tpu.memory_space<vmem>>, vector<1x32xf32>
    %c2_22 = arith.constant 2 : index
    %c0_23 = arith.constant 0 : index
    %19 = vector.load %arg3[%c2_22, %c0_23] : memref<8x32xf32, #tpu.memory_space<vmem>>, vector<1x32xf32>
    %c3_24 = arith.constant 3 : index
    %c0_25 = arith.constant 0 : index
    %20 = vector.load %arg3[%c3_24, %c0_25] : memref<8x32xf32, #tpu.memory_space<vmem>>, vector<1x32xf32>
    %21 = vector.shape_cast %17 : vector<1x32xf32> to vector<1x32xf32>
    %22 = vector.broadcast %21 : vector<1x32xf32> to vector<2x32xf32>
    %23 = vector.shape_cast %18 : vector<1x32xf32> to vector<1x32xf32>
    %24 = vector.broadcast %23 : vector<1x32xf32> to vector<2x32xf32>
    %cst = arith.constant 0.000000e+00 : f32
    %25 = vector.broadcast %cst : f32 to vector<2x32xf32>
    %cst_26 = arith.constant dense<0.000000e+00> : vector<2x32xf32>
    %26 = tpu.matmul %1, %16, %cst_26 {dimension_numbers = #tpu.dot_dimension_numbers<[1], [0], [0], [1], [0, 0, 1, 1], [], []>} : vector<2x16xf32>, vector<16x32xf32>, vector<2x32xf32> -> vector<2x32xf32>
    %27 = arith.addf %26, %22 : vector<2x32xf32>
    %28 = arith.mulf %24, %25 : vector<2x32xf32>
    %29 = arith.addf %27, %28 : vector<2x32xf32>
    %cst_27 = arith.constant 0.000000e+00 : f32
    %30 = vector.broadcast %cst_27 : f32 to vector<2x32xf32>
    %31 = arith.maximumf %29, %30 : vector<2x32xf32>
    %cst_28 = arith.constant dense<0.000000e+00> : vector<2x32xf32>
    %32 = tpu.matmul %3, %16, %cst_28 {dimension_numbers = #tpu.dot_dimension_numbers<[1], [0], [0], [1], [0, 0, 1, 1], [], []>} : vector<2x16xf32>, vector<16x32xf32>, vector<2x32xf32> -> vector<2x32xf32>
    %33 = arith.addf %32, %22 : vector<2x32xf32>
    %34 = arith.mulf %24, %31 : vector<2x32xf32>
    %35 = arith.addf %33, %34 : vector<2x32xf32>
    %cst_29 = arith.constant 0.000000e+00 : f32
    %36 = vector.broadcast %cst_29 : f32 to vector<2x32xf32>
    %37 = arith.maximumf %35, %36 : vector<2x32xf32>
    %cst_30 = arith.constant dense<0.000000e+00> : vector<2x32xf32>
    %38 = tpu.matmul %5, %16, %cst_30 {dimension_numbers = #tpu.dot_dimension_numbers<[1], [0], [0], [1], [0, 0, 1, 1], [], []>} : vector<2x16xf32>, vector<16x32xf32>, vector<2x32xf32> -> vector<2x32xf32>
    %39 = arith.addf %38, %22 : vector<2x32xf32>
    %40 = arith.mulf %24, %37 : vector<2x32xf32>
    %41 = arith.addf %39, %40 : vector<2x32xf32>
    %cst_31 = arith.constant 0.000000e+00 : f32
    %42 = vector.broadcast %cst_31 : f32 to vector<2x32xf32>
    %43 = arith.maximumf %41, %42 : vector<2x32xf32>
    %cst_32 = arith.constant dense<0.000000e+00> : vector<2x32xf32>
    %44 = tpu.matmul %7, %16, %cst_32 {dimension_numbers = #tpu.dot_dimension_numbers<[1], [0], [0], [1], [0, 0, 1, 1], [], []>} : vector<2x16xf32>, vector<16x32xf32>, vector<2x32xf32> -> vector<2x32xf32>
    %45 = arith.addf %44, %22 : vector<2x32xf32>
    %46 = arith.mulf %24, %43 : vector<2x32xf32>
    %47 = arith.addf %45, %46 : vector<2x32xf32>
    %cst_33 = arith.constant 0.000000e+00 : f32
    %48 = vector.broadcast %cst_33 : f32 to vector<2x32xf32>
    %49 = arith.maximumf %47, %48 : vector<2x32xf32>
    %cst_34 = arith.constant dense<0.000000e+00> : vector<2x32xf32>
    %50 = tpu.matmul %9, %16, %cst_34 {dimension_numbers = #tpu.dot_dimension_numbers<[1], [0], [0], [1], [0, 0, 1, 1], [], []>} : vector<2x16xf32>, vector<16x32xf32>, vector<2x32xf32> -> vector<2x32xf32>
    %51 = arith.addf %50, %22 : vector<2x32xf32>
    %52 = arith.mulf %24, %49 : vector<2x32xf32>
    %53 = arith.addf %51, %52 : vector<2x32xf32>
    %cst_35 = arith.constant 0.000000e+00 : f32
    %54 = vector.broadcast %cst_35 : f32 to vector<2x32xf32>
    %55 = arith.maximumf %53, %54 : vector<2x32xf32>
    %cst_36 = arith.constant dense<0.000000e+00> : vector<2x32xf32>
    %56 = tpu.matmul %11, %16, %cst_36 {dimension_numbers = #tpu.dot_dimension_numbers<[1], [0], [0], [1], [0, 0, 1, 1], [], []>} : vector<2x16xf32>, vector<16x32xf32>, vector<2x32xf32> -> vector<2x32xf32>
    %57 = arith.addf %56, %22 : vector<2x32xf32>
    %58 = arith.mulf %24, %55 : vector<2x32xf32>
    %59 = arith.addf %57, %58 : vector<2x32xf32>
    %cst_37 = arith.constant 0.000000e+00 : f32
    %60 = vector.broadcast %cst_37 : f32 to vector<2x32xf32>
    %61 = arith.maximumf %59, %60 : vector<2x32xf32>
    %cst_38 = arith.constant dense<0.000000e+00> : vector<2x32xf32>
    %62 = tpu.matmul %13, %16, %cst_38 {dimension_numbers = #tpu.dot_dimension_numbers<[1], [0], [0], [1], [0, 0, 1, 1], [], []>} : vector<2x16xf32>, vector<16x32xf32>, vector<2x32xf32> -> vector<2x32xf32>
    %63 = arith.addf %62, %22 : vector<2x32xf32>
    %64 = arith.mulf %24, %61 : vector<2x32xf32>
    %65 = arith.addf %63, %64 : vector<2x32xf32>
    %cst_39 = arith.constant 0.000000e+00 : f32
    %66 = vector.broadcast %cst_39 : f32 to vector<2x32xf32>
    %67 = arith.maximumf %65, %66 : vector<2x32xf32>
    %cst_40 = arith.constant dense<0.000000e+00> : vector<2x32xf32>
    %68 = tpu.matmul %15, %16, %cst_40 {dimension_numbers = #tpu.dot_dimension_numbers<[1], [0], [0], [1], [0, 0, 1, 1], [], []>} : vector<2x16xf32>, vector<16x32xf32>, vector<2x32xf32> -> vector<2x32xf32>
    %69 = arith.addf %68, %22 : vector<2x32xf32>
    %70 = arith.mulf %24, %67 : vector<2x32xf32>
    %71 = arith.addf %69, %70 : vector<2x32xf32>
    %cst_41 = arith.constant 0.000000e+00 : f32
    %72 = vector.broadcast %cst_41 : f32 to vector<2x32xf32>
    %73 = arith.maximumf %71, %72 : vector<2x32xf32>
    %74 = arith.addf %31, %37 : vector<2x32xf32>
    %75 = arith.addf %74, %43 : vector<2x32xf32>
    %76 = arith.addf %75, %49 : vector<2x32xf32>
    %77 = arith.addf %76, %55 : vector<2x32xf32>
    %78 = arith.addf %77, %61 : vector<2x32xf32>
    %79 = arith.addf %78, %67 : vector<2x32xf32>
    %80 = arith.addf %79, %73 : vector<2x32xf32>
    %cst_42 = arith.constant dense<0.000000e+00> : vector<32xf32>
    %81 = vector.multi_reduction <add>, %80, %cst_42 [0] : vector<2x32xf32> to vector<32xf32>
    %82 = vector.shape_cast %81 : vector<32xf32> to vector<1x32xf32>
    %cst_43 = arith.constant 1.600000e+01 : f32
    %83 = vector.broadcast %cst_43 : f32 to vector<1x32xf32>
    %84 = arith.divf %82, %83 : vector<1x32xf32>
    %85 = vector.shape_cast %84 : vector<1x32xf32> to vector<1x32xf32>
    %86 = vector.broadcast %85 : vector<1x32xf32> to vector<2x32xf32>
    %87 = arith.subf %31, %86 : vector<2x32xf32>
    %88 = arith.mulf %87, %87 : vector<2x32xf32>
    %89 = arith.subf %37, %86 : vector<2x32xf32>
    %90 = arith.mulf %89, %89 : vector<2x32xf32>
    %91 = arith.addf %88, %90 : vector<2x32xf32>
    %92 = arith.subf %43, %86 : vector<2x32xf32>
    %93 = arith.mulf %92, %92 : vector<2x32xf32>
    %94 = arith.addf %91, %93 : vector<2x32xf32>
    %95 = arith.subf %49, %86 : vector<2x32xf32>
    %96 = arith.mulf %95, %95 : vector<2x32xf32>
    %97 = arith.addf %94, %96 : vector<2x32xf32>
    %98 = arith.subf %55, %86 : vector<2x32xf32>
    %99 = arith.mulf %98, %98 : vector<2x32xf32>
    %100 = arith.addf %97, %99 : vector<2x32xf32>
    %101 = arith.subf %61, %86 : vector<2x32xf32>
    %102 = arith.mulf %101, %101 : vector<2x32xf32>
    %103 = arith.addf %100, %102 : vector<2x32xf32>
    %104 = arith.subf %67, %86 : vector<2x32xf32>
    %105 = arith.mulf %104, %104 : vector<2x32xf32>
    %106 = arith.addf %103, %105 : vector<2x32xf32>
    %107 = arith.subf %73, %86 : vector<2x32xf32>
    %108 = arith.mulf %107, %107 : vector<2x32xf32>
    %109 = arith.addf %106, %108 : vector<2x32xf32>
    %cst_44 = arith.constant dense<0.000000e+00> : vector<32xf32>
    %110 = vector.multi_reduction <add>, %109, %cst_44 [0] : vector<2x32xf32> to vector<32xf32>
    %111 = vector.shape_cast %110 : vector<32xf32> to vector<1x32xf32>
    %cst_45 = arith.constant 1.600000e+01 : f32
    %112 = vector.broadcast %cst_45 : f32 to vector<1x32xf32>
    %113 = arith.divf %111, %112 : vector<1x32xf32>
    %cst_46 = arith.constant 9.99999974E-6 : f32
    %114 = vector.broadcast %cst_46 : f32 to vector<1x32xf32>
    %115 = arith.addf %113, %114 : vector<1x32xf32>
    %116 = math.rsqrt %115 : vector<1x32xf32>
    %117 = arith.mulf %116, %19 : vector<1x32xf32>
    %118 = arith.mulf %84, %117 : vector<1x32xf32>
    %119 = arith.subf %20, %118 : vector<1x32xf32>
    %120 = vector.shape_cast %117 : vector<1x32xf32> to vector<1x32xf32>
    %121 = vector.broadcast %120 : vector<1x32xf32> to vector<2x32xf32>
    %122 = vector.shape_cast %119 : vector<1x32xf32> to vector<1x32xf32>
    %123 = vector.broadcast %122 : vector<1x32xf32> to vector<2x32xf32>
    %124 = arith.mulf %31, %121 : vector<2x32xf32>
    %125 = arith.addf %124, %123 : vector<2x32xf32>
    %126 = arith.mulf %37, %121 : vector<2x32xf32>
    %127 = arith.addf %126, %123 : vector<2x32xf32>
    %128 = arith.mulf %43, %121 : vector<2x32xf32>
    %129 = arith.addf %128, %123 : vector<2x32xf32>
    %130 = arith.mulf %49, %121 : vector<2x32xf32>
    %131 = arith.addf %130, %123 : vector<2x32xf32>
    %132 = arith.mulf %55, %121 : vector<2x32xf32>
    %133 = arith.addf %132, %123 : vector<2x32xf32>
    %134 = arith.mulf %61, %121 : vector<2x32xf32>
    %135 = arith.addf %134, %123 : vector<2x32xf32>
    %136 = arith.mulf %67, %121 : vector<2x32xf32>
    %137 = arith.addf %136, %123 : vector<2x32xf32>
    %138 = arith.mulf %73, %121 : vector<2x32xf32>
    %139 = arith.addf %138, %123 : vector<2x32xf32>
    %c0_47 = arith.constant 0 : index
    %c0_48 = arith.constant 0 : index
    %140 = vector.load %arg2[%c0_47, %c0_48] : memref<32x32xf32, #tpu.memory_space<vmem>>, vector<32x32xf32>
    %c4_49 = arith.constant 4 : index
    %c0_50 = arith.constant 0 : index
    %141 = vector.load %arg3[%c4_49, %c0_50] : memref<8x32xf32, #tpu.memory_space<vmem>>, vector<1x32xf32>
    %c5_51 = arith.constant 5 : index
    %c0_52 = arith.constant 0 : index
    %142 = vector.load %arg3[%c5_51, %c0_52] : memref<8x32xf32, #tpu.memory_space<vmem>>, vector<1x32xf32>
    %c6_53 = arith.constant 6 : index
    %c0_54 = arith.constant 0 : index
    %143 = vector.load %arg3[%c6_53, %c0_54] : memref<8x32xf32, #tpu.memory_space<vmem>>, vector<1x32xf32>
    %c7_55 = arith.constant 7 : index
    %c0_56 = arith.constant 0 : index
    %144 = vector.load %arg3[%c7_55, %c0_56] : memref<8x32xf32, #tpu.memory_space<vmem>>, vector<1x32xf32>
    %145 = vector.shape_cast %141 : vector<1x32xf32> to vector<1x32xf32>
    %146 = vector.broadcast %145 : vector<1x32xf32> to vector<2x32xf32>
    %147 = vector.shape_cast %142 : vector<1x32xf32> to vector<1x32xf32>
    %148 = vector.broadcast %147 : vector<1x32xf32> to vector<2x32xf32>
    %cst_57 = arith.constant 0.000000e+00 : f32
    %149 = vector.broadcast %cst_57 : f32 to vector<2x32xf32>
    %cst_58 = arith.constant dense<0.000000e+00> : vector<2x32xf32>
    %150 = tpu.matmul %125, %140, %cst_58 {dimension_numbers = #tpu.dot_dimension_numbers<[1], [0], [0], [1], [0, 0, 1, 1], [], []>} : vector<2x32xf32>, vector<32x32xf32>, vector<2x32xf32> -> vector<2x32xf32>
    %151 = arith.addf %150, %146 : vector<2x32xf32>
    %152 = arith.mulf %148, %149 : vector<2x32xf32>
    %153 = arith.addf %151, %152 : vector<2x32xf32>
    %cst_59 = arith.constant 0.000000e+00 : f32
    %154 = vector.broadcast %cst_59 : f32 to vector<2x32xf32>
    %155 = arith.maximumf %153, %154 : vector<2x32xf32>
    %cst_60 = arith.constant dense<0.000000e+00> : vector<2x32xf32>
    %156 = tpu.matmul %127, %140, %cst_60 {dimension_numbers = #tpu.dot_dimension_numbers<[1], [0], [0], [1], [0, 0, 1, 1], [], []>} : vector<2x32xf32>, vector<32x32xf32>, vector<2x32xf32> -> vector<2x32xf32>
    %157 = arith.addf %156, %146 : vector<2x32xf32>
    %158 = arith.mulf %148, %155 : vector<2x32xf32>
    %159 = arith.addf %157, %158 : vector<2x32xf32>
    %cst_61 = arith.constant 0.000000e+00 : f32
    %160 = vector.broadcast %cst_61 : f32 to vector<2x32xf32>
    %161 = arith.maximumf %159, %160 : vector<2x32xf32>
    %cst_62 = arith.constant dense<0.000000e+00> : vector<2x32xf32>
    %162 = tpu.matmul %129, %140, %cst_62 {dimension_numbers = #tpu.dot_dimension_numbers<[1], [0], [0], [1], [0, 0, 1, 1], [], []>} : vector<2x32xf32>, vector<32x32xf32>, vector<2x32xf32> -> vector<2x32xf32>
    %163 = arith.addf %162, %146 : vector<2x32xf32>
    %164 = arith.mulf %148, %161 : vector<2x32xf32>
    %165 = arith.addf %163, %164 : vector<2x32xf32>
    %cst_63 = arith.constant 0.000000e+00 : f32
    %166 = vector.broadcast %cst_63 : f32 to vector<2x32xf32>
    %167 = arith.maximumf %165, %166 : vector<2x32xf32>
    %cst_64 = arith.constant dense<0.000000e+00> : vector<2x32xf32>
    %168 = tpu.matmul %131, %140, %cst_64 {dimension_numbers = #tpu.dot_dimension_numbers<[1], [0], [0], [1], [0, 0, 1, 1], [], []>} : vector<2x32xf32>, vector<32x32xf32>, vector<2x32xf32> -> vector<2x32xf32>
    %169 = arith.addf %168, %146 : vector<2x32xf32>
    %170 = arith.mulf %148, %167 : vector<2x32xf32>
    %171 = arith.addf %169, %170 : vector<2x32xf32>
    %cst_65 = arith.constant 0.000000e+00 : f32
    %172 = vector.broadcast %cst_65 : f32 to vector<2x32xf32>
    %173 = arith.maximumf %171, %172 : vector<2x32xf32>
    %cst_66 = arith.constant dense<0.000000e+00> : vector<2x32xf32>
    %174 = tpu.matmul %133, %140, %cst_66 {dimension_numbers = #tpu.dot_dimension_numbers<[1], [0], [0], [1], [0, 0, 1, 1], [], []>} : vector<2x32xf32>, vector<32x32xf32>, vector<2x32xf32> -> vector<2x32xf32>
    %175 = arith.addf %174, %146 : vector<2x32xf32>
    %176 = arith.mulf %148, %173 : vector<2x32xf32>
    %177 = arith.addf %175, %176 : vector<2x32xf32>
    %cst_67 = arith.constant 0.000000e+00 : f32
    %178 = vector.broadcast %cst_67 : f32 to vector<2x32xf32>
    %179 = arith.maximumf %177, %178 : vector<2x32xf32>
    %cst_68 = arith.constant dense<0.000000e+00> : vector<2x32xf32>
    %180 = tpu.matmul %135, %140, %cst_68 {dimension_numbers = #tpu.dot_dimension_numbers<[1], [0], [0], [1], [0, 0, 1, 1], [], []>} : vector<2x32xf32>, vector<32x32xf32>, vector<2x32xf32> -> vector<2x32xf32>
    %181 = arith.addf %180, %146 : vector<2x32xf32>
    %182 = arith.mulf %148, %179 : vector<2x32xf32>
    %183 = arith.addf %181, %182 : vector<2x32xf32>
    %cst_69 = arith.constant 0.000000e+00 : f32
    %184 = vector.broadcast %cst_69 : f32 to vector<2x32xf32>
    %185 = arith.maximumf %183, %184 : vector<2x32xf32>
    %cst_70 = arith.constant dense<0.000000e+00> : vector<2x32xf32>
    %186 = tpu.matmul %137, %140, %cst_70 {dimension_numbers = #tpu.dot_dimension_numbers<[1], [0], [0], [1], [0, 0, 1, 1], [], []>} : vector<2x32xf32>, vector<32x32xf32>, vector<2x32xf32> -> vector<2x32xf32>
    %187 = arith.addf %186, %146 : vector<2x32xf32>
    %188 = arith.mulf %148, %185 : vector<2x32xf32>
    %189 = arith.addf %187, %188 : vector<2x32xf32>
    %cst_71 = arith.constant 0.000000e+00 : f32
    %190 = vector.broadcast %cst_71 : f32 to vector<2x32xf32>
    %191 = arith.maximumf %189, %190 : vector<2x32xf32>
    %cst_72 = arith.constant dense<0.000000e+00> : vector<2x32xf32>
    %192 = tpu.matmul %139, %140, %cst_72 {dimension_numbers = #tpu.dot_dimension_numbers<[1], [0], [0], [1], [0, 0, 1, 1], [], []>} : vector<2x32xf32>, vector<32x32xf32>, vector<2x32xf32> -> vector<2x32xf32>
    %193 = arith.addf %192, %146 : vector<2x32xf32>
    %194 = arith.mulf %148, %191 : vector<2x32xf32>
    %195 = arith.addf %193, %194 : vector<2x32xf32>
    %cst_73 = arith.constant 0.000000e+00 : f32
    %196 = vector.broadcast %cst_73 : f32 to vector<2x32xf32>
    %197 = arith.maximumf %195, %196 : vector<2x32xf32>
    %198 = arith.addf %155, %161 : vector<2x32xf32>
    %199 = arith.addf %198, %167 : vector<2x32xf32>
    %200 = arith.addf %199, %173 : vector<2x32xf32>
    %201 = arith.addf %200, %179 : vector<2x32xf32>
    %202 = arith.addf %201, %185 : vector<2x32xf32>
    %203 = arith.addf %202, %191 : vector<2x32xf32>
    %204 = arith.addf %203, %197 : vector<2x32xf32>
    %cst_74 = arith.constant dense<0.000000e+00> : vector<32xf32>
    %205 = vector.multi_reduction <add>, %204, %cst_74 [0] : vector<2x32xf32> to vector<32xf32>
    %206 = vector.shape_cast %205 : vector<32xf32> to vector<1x32xf32>
    %cst_75 = arith.constant 1.600000e+01 : f32
    %207 = vector.broadcast %cst_75 : f32 to vector<1x32xf32>
    %208 = arith.divf %206, %207 : vector<1x32xf32>
    %209 = vector.shape_cast %208 : vector<1x32xf32> to vector<1x32xf32>
    %210 = vector.broadcast %209 : vector<1x32xf32> to vector<2x32xf32>
    %211 = arith.subf %155, %210 : vector<2x32xf32>
    %212 = arith.mulf %211, %211 : vector<2x32xf32>
    %213 = arith.subf %161, %210 : vector<2x32xf32>
    %214 = arith.mulf %213, %213 : vector<2x32xf32>
    %215 = arith.addf %212, %214 : vector<2x32xf32>
    %216 = arith.subf %167, %210 : vector<2x32xf32>
    %217 = arith.mulf %216, %216 : vector<2x32xf32>
    %218 = arith.addf %215, %217 : vector<2x32xf32>
    %219 = arith.subf %173, %210 : vector<2x32xf32>
    %220 = arith.mulf %219, %219 : vector<2x32xf32>
    %221 = arith.addf %218, %220 : vector<2x32xf32>
    %222 = arith.subf %179, %210 : vector<2x32xf32>
    %223 = arith.mulf %222, %222 : vector<2x32xf32>
    %224 = arith.addf %221, %223 : vector<2x32xf32>
    %225 = arith.subf %185, %210 : vector<2x32xf32>
    %226 = arith.mulf %225, %225 : vector<2x32xf32>
    %227 = arith.addf %224, %226 : vector<2x32xf32>
    %228 = arith.subf %191, %210 : vector<2x32xf32>
    %229 = arith.mulf %228, %228 : vector<2x32xf32>
    %230 = arith.addf %227, %229 : vector<2x32xf32>
    %231 = arith.subf %197, %210 : vector<2x32xf32>
    %232 = arith.mulf %231, %231 : vector<2x32xf32>
    %233 = arith.addf %230, %232 : vector<2x32xf32>
    %cst_76 = arith.constant dense<0.000000e+00> : vector<32xf32>
    %234 = vector.multi_reduction <add>, %233, %cst_76 [0] : vector<2x32xf32> to vector<32xf32>
    %235 = vector.shape_cast %234 : vector<32xf32> to vector<1x32xf32>
    %cst_77 = arith.constant 1.600000e+01 : f32
    %236 = vector.broadcast %cst_77 : f32 to vector<1x32xf32>
    %237 = arith.divf %235, %236 : vector<1x32xf32>
    %cst_78 = arith.constant 9.99999974E-6 : f32
    %238 = vector.broadcast %cst_78 : f32 to vector<1x32xf32>
    %239 = arith.addf %237, %238 : vector<1x32xf32>
    %240 = math.rsqrt %239 : vector<1x32xf32>
    %241 = arith.mulf %240, %143 : vector<1x32xf32>
    %242 = arith.mulf %208, %241 : vector<1x32xf32>
    %243 = arith.subf %144, %242 : vector<1x32xf32>
    %244 = vector.shape_cast %241 : vector<1x32xf32> to vector<1x32xf32>
    %245 = vector.broadcast %244 : vector<1x32xf32> to vector<2x32xf32>
    %246 = vector.shape_cast %243 : vector<1x32xf32> to vector<1x32xf32>
    %247 = vector.broadcast %246 : vector<1x32xf32> to vector<2x32xf32>
    %248 = arith.mulf %197, %245 : vector<2x32xf32>
    %249 = arith.addf %248, %247 : vector<2x32xf32>
    %c0_79 = arith.constant 0 : index
    %c0_80 = arith.constant 0 : index
    %250 = vector.load %arg4[%c0_79, %c0_80] : memref<32x10xf32, #tpu.memory_space<vmem>>, vector<32x10xf32>
    %cst_81 = arith.constant dense<0.000000e+00> : vector<2x10xf32>
    %251 = tpu.matmul %249, %250, %cst_81 {dimension_numbers = #tpu.dot_dimension_numbers<[1], [0], [0], [1], [0, 0, 1, 1], [], []>} : vector<2x32xf32>, vector<32x10xf32>, vector<2x10xf32> -> vector<2x10xf32>
    %c0_82 = arith.constant 0 : index
    %c0_83 = arith.constant 0 : index
    %252 = vector.load %arg5[%c0_82, %c0_83] : memref<1x10xf32, #tpu.memory_space<vmem>>, vector<1x10xf32>
    %253 = vector.broadcast %252 : vector<1x10xf32> to vector<2x10xf32>
    %254 = arith.addf %251, %253 : vector<2x10xf32>
    %c0_84 = arith.constant 0 : index
    %c0_85 = arith.constant 0 : index
    %255 = vector.load %arg6[%c0_84, %c0_85] : memref<2x10xf32, #tpu.memory_space<vmem>>, vector<2x10xf32>
    tpu.vector_store %arg6[%c0_84, %c0_85], %254 {strides = array<i32>} : memref<2x10xf32, #tpu.memory_space<vmem>>, vector<2x10xf32>,
    return
  }
}

</mosaic_0001>

<bundles_post_ra>
// kernel: stacked_indrnn_encoder.1
= control target key start
LH: loop header
LB: loop body
LE: loop exit
PB: predicated region body
PF: predicated region fallthrough
CT: control target
= control target key end

     0   :  { %11 = vsyncpa [#allocation3], 0  ;;  %s1016_s0 = inlined_call_operand.vmem [shape: f32[8,2,16], index: 0, kind: input, shape index: {}]   ;;  %s1017_s1 = inlined_call_operand.hbm [shape: f32[16,32], index: 1, kind: input, shape index: {}]   ;;  %s1018_s2 = inlined_call_operand.vmem [shape: f32[32,32], index: 2, kind: input, shape index: {}]   ;;  %s1019_s3 = inlined_call_operand.hbm [shape: f32[8,32], index: 3, kind: input, shape index: {}]   ;;  %s1020_s4 = inlined_call_operand.vmem [shape: f32[32,10], index: 4, kind: input, shape index: {}]   ;;  %s1021_s5 = inlined_call_operand.vmem [shape: f32[1,10], index: 5, kind: input, shape index: {}]   ;;  %s1022_s6 = inlined_call_operand.hbm [shape: f32[2,10], index: 6, kind: output, shape index: {}]  }
   0x1   :  { %12 = vsyncpa [#allocation6], 0 }
   0x2   :  { %13 = vsyncpa [#allocation4], 0  ;;  %s20_s23 = sshll.u32 %s1017_s1, 4  ;;  %s825_s24 = smov [#allocation2]   ;;  %s21_s23 = int_to_ptr.hbm [resolvable:$true] %s20_s23 }
   0x3   :  { %s22_s25 = sshll.u32 %s825_s24, 4  ;;  %s36_s28 = sshll.u32 %s1019_s3, 4  ;;  %s23_s25 = int_to_ptr.vmem [resolvable:$true] %s22_s25  ;;  %s37_s28 = int_to_ptr.hbm [resolvable:$true] %s36_s28 }
   0x4   :  { %s826_s29 = smov 128   ;;  %s827_s30 = smov 8  }
   0x5   :  { %28 = dma.hbm_to_vmem [thread:$0]  %s21_s23, 256, %s23_s25, [#allocation3], %s826_s29, %s826_s29, %s827_s30  }
   0x6   :  { %s828_s7 = smov [#allocation5]  }
   0x7   :  { %s38_s8 = sshll.u32 %s828_s7, 4  ;;  %s39_s8 = int_to_ptr.vmem [resolvable:$true] %s38_s8 }
   0x8   :  { %41 = dma.hbm_to_vmem [thread:$0]  %s37_s28, 128, %s39_s8, [#allocation6]  }
   0x9   :  { %819 = dma.done.wait [#allocation3], 256  }
   0xa   :  { %820 = vsyncadd [#allocation3], 4294967040 }
   0xb   :  { %821 = dma.done.wait [#allocation6], 128  }
   0xc   :  { %822 = vsyncadd [#allocation6], 4294967168  ;;  %v70_v0 = vld [vmem:[#allocation2 + $0x8] sm:$0xff]  ;;  %v69_v1 = vld [vmem:[#allocation2] sm:$0xff]  ;;  %vm77_vm0 = vcmask 130048   ;;  %v829_v44 = vmov 16.0  }
   0xd   :  { %95 = vmatpush.msra.mxu0 %v70_v0  ;;  %v54_v2 = vld [vmem:[%s1016_s0] sm:$0x3]  ;;  %121 = vmatpush.msra.mxu1 %v70_v0  ;;  %v706_v3 = vld [vmem:[%s1016_s0 + $0x2] sm:$0x3]  ;;  %v707_v4 = vld [vmem:[%s1016_s0 + $0x4] sm:$0x3]  ;;  %741 = vrcp.f32 %v829_v44 }
   0xe   :  { %147 = vmatpush.msra.mxu2 %v70_v0  ;;  %173 = vmatpush.msra.mxu3 %v70_v0  ;;  %v708_v5 = vld [vmem:[%s1016_s0 + $0x6] sm:$0x3]  ;;  %v709_v6 = vld [vmem:[%s1016_s0 + $0x8] sm:$0x3]  ;;  %v710_v7 = vld [vmem:[%s1016_s0 + $0xa] sm:$0x3] }
   0xf   :  { %96 = vmatpush.msra.mxu0 %v69_v1  ;;  %122 = vmatpush.msra.mxu1 %v69_v1  ;;  %v711_v8 = vld [vmem:[%s1016_s0 + $0xc] sm:$0x3]  ;;  %v712_v9 = vld [vmem:[%s1016_s0 + $0xe] sm:$0x3]  ;;  %v737_v10 = vld [vmem:[#allocation5 + $0x1] ss:$0 sm:$0xff] }
  0x10   :  { %713 = vmatmul.msk.f32.vlgmr.msra.gmra.mxu0 %vm77_vm0, %v54_v2  ;;  %148 = vmatpush.msra.mxu2 %v69_v1  ;;  %v736_v11 = vld [vmem:[#allocation5] ss:$0 sm:$0xff]  ;;  %v101_v12 = vmul.f32 0.0, %v737_v10  ;;  %vm293_vm1 = vcmask 254976   ;;  %vm382_vm6 = vcmask 261120   ;;  %s830_s12 = smov [#allocation7]  }
  0x11   :  { %714 = vmatmul.msk.f32.vlgmr.msra.gmra.mxu1 %vm77_vm0, %v706_v3  ;;  %715 = vmatmul.msk.f32.vlgmr.msra.gmra.mxu2 %vm77_vm0, %v707_v4  ;;  %s693_s13 = sshll.u32 %s830_s12, 4  ;;  %s695_s16 = sshll.u32 %s1022_s6, 4  ;;  %vm686_vm10 = vcmask 74752   ;;  %s694_s13 = int_to_ptr.vmem [resolvable:$true] %s693_s13  ;;  %s696_s16 = int_to_ptr.hbm [resolvable:$true] %s695_s16 }
  0x12   :  { %174 = vmatpush.msra.mxu3 %v69_v1  ;;  %199 = vmatpush.msrb.mxu0 %v70_v0 }
  0x13   :  { %716 = vmatmul.msk.f32.vlgmr.msra.gmra.mxu3 %vm77_vm0, %v708_v5  ;;  %225 = vmatpush.msrb.mxu1 %v70_v0  ;;  %v742_v53 = vpop.eup %741 }
  0x14   :  { %200 = vmatpush.msrb.mxu0 %v69_v1  ;;  %251 = vmatpush.msrb.mxu2 %v70_v0  ;;  %v302_v58 = vmul.f32 16.0, %v742_v53  ;;  %vm306_vm2 = vweird.f32 %v742_v53 }
  0x15   :  { %226 = vmatpush.msrb.mxu1 %v69_v1  ;;  %277 = vmatpush.msrb.mxu3 %v70_v0 }
  0x16   :  { %252 = vmatpush.msrb.mxu2 %v69_v1  ;;  %v303_v62 = vsub.f32 1.0, %v302_v58  ;;  %v73_v58 = vld [vmem:[#allocation5 + $0x2] sm:$0x1] }
  0x17   :  { %278 = vmatpush.msrb.mxu3 %v69_v1 }
  0x18   :  { %717 = vmatmul.msk.f32.vlgmr.msrb.gmra.mxu0 %vm77_vm0, %v709_v6  ;;  %v304_v1 = vmul.f32 %v742_v53, %v303_v62 }
  0x19   :  { %718 = vmatmul.msk.f32.vlgmr.msrb.gmra.mxu1 %vm77_vm0, %v710_v7  ;;  %719 = vmatmul.msk.f32.vlgmr.msrb.gmra.mxu2 %vm77_vm0, %v711_v8 }
  0x1a   :  { %v305_v4 = vadd.f32 %v742_v53, %v304_v1 }
  0x1b   :  { %720 = vmatmul.msk.f32.vlgmr.msrb.gmra.mxu3 %vm77_vm0, %v712_v9 }
  0x1c   :  { %v936_v7 = vsel %vm306_vm2, %v742_v53, %v305_v4 }
  0x8d   :  { %v98_v13 = vpop.f32.mrf.mxu0 }
  0x8e   :  { %v99_v14 = vadd.f32 %v736_v11, %v98_v13  ;;  %v124_v15 = vpop.f32.mrf.mxu1 }
  0x8f   :  { %v125_v18 = vadd.f32 %v736_v11, %v124_v15 }
  0x90   :  { %v102_v16 = vadd.f32 %v101_v12, %v99_v14 }
  0x92   :  { %v904_v17 = vmax.f32 %v102_v16, 0.0 }
  0x94   :  { %v127_v19 = vmul.f32 %v737_v10, %v904_v17  ;;  %v150_v20 = vpop.f32.mrf.mxu2 }
  0x95   :  { %v151_v23 = vadd.f32 %v736_v11, %v150_v20  ;;  %v202_v30 = vpop.f32.mrf.mxu0 }
  0x96   :  { %v128_v21 = vadd.f32 %v127_v19, %v125_v18  ;;  %v176_v25 = vpop.f32.mrf.mxu3  ;;  %v203_v33 = vadd.f32 %v736_v11, %v202_v30  ;;  %v228_v35 = vpop.f32.mrf.mxu1 }
  0x97   :  { %v177_v28 = vadd.f32 %v736_v11, %v176_v25  ;;  %v229_v38 = vadd.f32 %v736_v11, %v228_v35 }
  0x98   :  { %v907_v22 = vmax.f32 %v128_v21, 0.0 }
  0x9a   :  { %v153_v24 = vmul.f32 %v737_v10, %v907_v22  ;;  %v286_v45 = vadd.f32 %v907_v22, %v904_v17 }
  0x9c   :  { %v154_v26 = vadd.f32 %v153_v24, %v151_v23  ;;  %v254_v40 = vpop.f32.mrf.mxu2 }
  0x9d   :  { %v255_v43 = vadd.f32 %v736_v11, %v254_v40 }
  0x9e   :  { %v910_v27 = vmax.f32 %v154_v26, 0.0  ;;  %v280_v47 = vpop.f32.mrf.mxu3 }
  0x9f   :  { %v281_v52 = vadd.f32 %v736_v11, %v280_v47  ;;  %v373_v47 = vld [vmem:[%s1018_s2 + $0x8] sm:$0xff] }
  0xa0   :  { %v179_v29 = vmul.f32 %v737_v10, %v910_v27  ;;  %v287_v48 = vadd.f32 %v286_v45, %v910_v27  ;;  %v374_v45 = vld [vmem:[%s1018_s2 + $0x10] sm:$0xff] }
  0xa2   :  { %v180_v31 = vadd.f32 %v179_v29, %v177_v28 }
  0xa4   :  { %v913_v32 = vmax.f32 %v180_v31, 0.0 }
  0xa6   :  { %v205_v34 = vmul.f32 %v737_v10, %v913_v32  ;;  %v288_v50 = vadd.f32 %v287_v48, %v913_v32 }
  0xa8   :  { %v206_v36 = vadd.f32 %v205_v34, %v203_v33 }
  0xaa   :  { %v916_v37 = vmax.f32 %v206_v36, 0.0 }
  0xac   :  { %v231_v39 = vmul.f32 %v737_v10, %v916_v37  ;;  %v289_v54 = vadd.f32 %v288_v50, %v916_v37 }
  0xae   :  { %v232_v41 = vadd.f32 %v231_v39, %v229_v38 }
  0xb0   :  { %v919_v42 = vmax.f32 %v232_v41, 0.0 }
  0xb2   :  { %v257_v46 = vmul.f32 %v737_v10, %v919_v42  ;;  %v290_v56 = vadd.f32 %v289_v54, %v919_v42 }
  0xb4   :  { %v258_v49 = vadd.f32 %v257_v46, %v255_v43  ;;  %v375_v43 = vld [vmem:[%s1018_s2 + $0x18] sm:$0xff] }
  0xb5   :  { %398 = vmatpush.msra.mxu0 %v375_v43  ;;  %424 = vmatpush.msra.mxu1 %v375_v43 }
  0xb6   :  { %v926_v51 = vmax.f32 %v258_v49, 0.0  ;;  %450 = vmatpush.msra.mxu2 %v375_v43  ;;  %476 = vmatpush.msra.mxu3 %v375_v43  ;;  %v372_v49 = vld [vmem:[%s1018_s2] sm:$0xff] }
  0xb7   :  { %399 = vmatpush.msra.mxu0 %v374_v45  ;;  %425 = vmatpush.msra.mxu1 %v374_v45 }
  0xb8   :  { %v283_v55 = vmul.f32 %v737_v10, %v926_v51  ;;  %v291_v60 = vadd.f32 %v290_v56, %v926_v51  ;;  %451 = vmatpush.msra.mxu2 %v374_v45  ;;  %477 = vmatpush.msra.mxu3 %v374_v45 }
  0xb9   :  { %400 = vmatpush.msra.mxu0 %v373_v47  ;;  %426 = vmatpush.msra.mxu1 %v373_v47 }
  0xba   :  { %v284_v57 = vadd.f32 %v283_v55, %v281_v52  ;;  %452 = vmatpush.msra.mxu2 %v373_v47  ;;  %478 = vmatpush.msra.mxu3 %v373_v47 }
  0xbb   :  { %401 = vmatpush.msra.mxu0 %v372_v49  ;;  %427 = vmatpush.msra.mxu1 %v372_v49 }
  0xbc   :  { %v931_v59 = vmax.f32 %v284_v57, 0.0  ;;  %453 = vmatpush.msra.mxu2 %v372_v49  ;;  %479 = vmatpush.msra.mxu3 %v372_v49 }
  0xbd   :  { %502 = vmatpush.msrb.mxu0 %v375_v43  ;;  %528 = vmatpush.msrb.mxu1 %v375_v43 }
  0xbe   :  { %v292_v61 = vadd.f32 %v291_v60, %v931_v59  ;;  %554 = vmatpush.msrb.mxu2 %v375_v43  ;;  %580 = vmatpush.msrb.mxu3 %v375_v43 }
  0xbf   :  { %503 = vmatpush.msrb.mxu0 %v374_v45  ;;  %529 = vmatpush.msrb.mxu1 %v374_v45 }
  0xc0   :  { %v294_v63 = vsel %vm293_vm1, %v292_v61, 0.0  ;;  %555 = vmatpush.msrb.mxu2 %v374_v45  ;;  %581 = vmatpush.msrb.mxu3 %v374_v45 }
  0xc1   :  { %v295_v0 = vrot.slane %v294_v63, 4  ;;  %504 = vmatpush.msrb.mxu0 %v373_v47  ;;  %530 = vmatpush.msrb.mxu1 %v373_v47 }
  0xc2   :  { %556 = vmatpush.msrb.mxu2 %v373_v47  ;;  %582 = vmatpush.msrb.mxu3 %v373_v47 }
  0xc3   :  { %v296_v2 = vadd.f32 %v295_v0, %v294_v63  ;;  %505 = vmatpush.msrb.mxu0 %v372_v49  ;;  %531 = vmatpush.msrb.mxu1 %v372_v49  ;;  %v74_v63 = vld [vmem:[#allocation5 + $0x3] sm:$0x1] }
  0xc4   :  { %557 = vmatpush.msrb.mxu2 %v372_v49  ;;  %583 = vmatpush.msrb.mxu3 %v372_v49 }
  0xc5   :  { %v297_v3 = vrot.slane %v296_v2, 2 }
  0xc7   :  { %v298_v5 = vadd.f32 %v297_v3, %v296_v2 }
  0xc9   :  { %v299_v6 = vrot.slane %v298_v5, 1 }
  0xcb   :  { %v300_v8 = vadd.f32 %v299_v6, %v298_v5 }
  0xcd   :  { %v939_v9 = vmul.f32 %v936_v7, %v300_v8 }
  0xcf   :  { %v309_v10 = vsub.f32 %v904_v17, %v939_v9  ;;  %v311_v11 = vsub.f32 %v907_v22, %v939_v9  ;;  %v314_v12 = vsub.f32 %v910_v27, %v939_v9  ;;  %v317_v15 = vsub.f32 %v913_v32, %v939_v9 }
  0xd0   :  { %v320_v19 = vsub.f32 %v916_v37, %v939_v9  ;;  %v323_v23 = vsub.f32 %v919_v42, %v939_v9  ;;  %v326_v26 = vsub.f32 %v926_v51, %v939_v9  ;;  %v329_v30 = vsub.f32 %v931_v59, %v939_v9 }
  0xd1   :  { %v310_v13 = vmul.f32 %v309_v10, %v309_v10  ;;  %v312_v14 = vmul.f32 %v311_v11, %v311_v11  ;;  %v315_v18 = vmul.f32 %v314_v12, %v314_v12  ;;  %v318_v21 = vmul.f32 %v317_v15, %v317_v15 }
  0xd2   :  { %v321_v25 = vmul.f32 %v320_v19, %v320_v19  ;;  %v324_v29 = vmul.f32 %v323_v23, %v323_v23  ;;  %v327_v33 = vmul.f32 %v326_v26, %v326_v26  ;;  %v330_v35 = vmul.f32 %v329_v30, %v329_v30 }
  0xd3   :  { %v313_v16 = vadd.f32 %v312_v14, %v310_v13 }
  0xd5   :  { %v316_v20 = vadd.f32 %v315_v18, %v313_v16  ;;  %v739_v18 = vld [vmem:[#allocation5 + $0x5] ss:$0 sm:$0xff] }
  0xd6   :  { %v406_v19 = vmul.f32 0.0, %v739_v18 }
  0xd7   :  { %v319_v24 = vadd.f32 %v318_v21, %v316_v20 }
  0xd9   :  { %v322_v28 = vadd.f32 %v321_v25, %v319_v24 }
  0xdb   :  { %v325_v31 = vadd.f32 %v324_v29, %v322_v28 }
  0xdd   :  { %v328_v34 = vadd.f32 %v327_v33, %v325_v31 }
  0xdf   :  { %v331_v36 = vadd.f32 %v330_v35, %v328_v34 }
  0xe1   :  { %v332_v38 = vsel %vm293_vm1, %v331_v36, 0.0 }
  0xe2   :  { %v333_v39 = vrot.slane %v332_v38, 4 }
  0xe4   :  { %v334_v40 = vadd.f32 %v333_v39, %v332_v38 }
  0xe6   :  { %v335_v41 = vrot.slane %v334_v40, 2 }
  0xe8   :  { %v336_v44 = vadd.f32 %v335_v41, %v334_v40 }
  0xea   :  { %v337_v46 = vrot.slane %v336_v44, 1 }
  0xec   :  { %v338_v48 = vadd.f32 %v337_v46, %v336_v44 }
  0xee   :  { %v339_v50 = vmul.f32 %v338_v48, %v936_v7 }
  0xf0   :  { %v340_v52 = vadd.f32 1e-05, %v339_v50 }
  0xf2   :  { %743 = vrsqrt.f32 %v340_v52  ;;  %vm347_vm4 = vweird.f32 %v340_v52 }
  0xf8   :  { %v744_v53 = vpop.eup %743 }
  0xf9   :  { %v342_v54 = vmul.f32 %v744_v53, %v340_v52  ;;  %vm348_vm3 = vweird.f32 %v744_v53 }
  0xfa   :  { %vm349_vm5 = vmor %vm347_vm4, %vm348_vm3 }
  0xfb   :  { %v343_v55 = vmul.f32 %v744_v53, %v342_v54 }
  0xfd   :  { %v344_v56 = vmul.f32 0.5, %v343_v55 }
  0xff   :  { %v345_v57 = vsub.f32 1.5, %v344_v56 }
 0x101   :  { %v346_v60 = vmul.f32 %v744_v53, %v345_v57 }
 0x103   :  { %v350_v61 = vsel %vm349_vm5, %v744_v53, %v346_v60 }
 0x104   :  { %v351_v62 = vmul.f32 %v350_v61, %v73_v58 }
 0x106   :  { %v352_v0 = vmul.f32 %v351_v62, %v939_v9  ;;  %v354_v1 = vperm.slane %v351_v62, 0 }
 0x108   :  { %v353_v2 = vsub.f32 %v74_v63, %v352_v0  ;;  %v356_v4 = vmul.f32 %v354_v1, %v904_v17  ;;  %v358_v5 = vmul.f32 %v354_v1, %v907_v22  ;;  %v360_v6 = vmul.f32 %v354_v1, %v910_v27 }
 0x109   :  { %v362_v8 = vmul.f32 %v354_v1, %v913_v32  ;;  %v364_v17 = vmul.f32 %v354_v1, %v916_v37  ;;  %v366_v22 = vmul.f32 %v354_v1, %v919_v42  ;;  %v370_v27 = vmul.f32 %v354_v1, %v931_v59  ;;  %v738_v37 = vld [vmem:[#allocation5 + $0x4] ss:$0 sm:$0xff] }
 0x10a   :  { %v355_v3 = vperm.slane %v353_v2, 0  ;;  %v368_v32 = vmul.f32 %v354_v1, %v926_v51 }
 0x10c   :  { %v357_v10 = vadd.f32 %v356_v4, %v355_v3  ;;  %v359_v11 = vadd.f32 %v358_v5, %v355_v3  ;;  %v361_v12 = vadd.f32 %v360_v6, %v355_v3  ;;  %v363_v13 = vadd.f32 %v362_v8, %v355_v3 }
 0x10d   :  { %v365_v9 = vadd.f32 %v364_v17, %v355_v3  ;;  %v367_v14 = vadd.f32 %v366_v22, %v355_v3  ;;  %v371_v15 = vadd.f32 %v370_v27, %v355_v3  ;;  %v369_v16 = vadd.f32 %v368_v32, %v355_v3 }
 0x10e   :  { %721 = vmatmul.msk.f32.vlgmr.msra.gmra.mxu0 %vm382_vm6, %v357_v10  ;;  %722 = vmatmul.msk.f32.vlgmr.msra.gmra.mxu1 %vm382_vm6, %v359_v11 }
 0x10f   :  { %723 = vmatmul.msk.f32.vlgmr.msra.gmra.mxu2 %vm382_vm6, %v361_v12  ;;  %724 = vmatmul.msk.f32.vlgmr.msra.gmra.mxu3 %vm382_vm6, %v363_v13 }
 0x116   :  { %725 = vmatmul.msk.f32.vlgmr.msrb.gmra.mxu0 %vm382_vm6, %v365_v9  ;;  %726 = vmatmul.msk.f32.vlgmr.msrb.gmra.mxu1 %vm382_vm6, %v367_v14 }
 0x117   :  { %727 = vmatmul.msk.f32.vlgmr.msrb.gmra.mxu2 %vm382_vm6, %v369_v16  ;;  %728 = vmatmul.msk.f32.vlgmr.msrb.gmra.mxu3 %vm382_vm6, %v371_v15 }
 0x18b   :  { %v403_v42 = vpop.f32.mrf.mxu0  ;;  %v429_v21 = vpop.f32.mrf.mxu1 }
 0x18c   :  { %v404_v20 = vadd.f32 %v738_v37, %v403_v42  ;;  %v430_v23 = vadd.f32 %v738_v37, %v429_v21 }
 0x18e   :  { %v407_v59 = vadd.f32 %v406_v19, %v404_v20 }
 0x190   :  { %v408_v51 = vmax.f32 %v407_v59, 0.0 }
 0x192   :  { %v432_v24 = vmul.f32 %v739_v18, %v408_v51  ;;  %v455_v26 = vpop.f32.mrf.mxu2  ;;  %v481_v33 = vpop.f32.mrf.mxu3 }
 0x193   :  { %v456_v29 = vadd.f32 %v738_v37, %v455_v26  ;;  %v482_v35 = vadd.f32 %v738_v37, %v481_v33  ;;  %v507_v39 = vpop.f32.mrf.mxu0  ;;  %v533_v45 = vpop.f32.mrf.mxu1 }
 0x194   :  { %v433_v25 = vadd.f32 %v432_v24, %v430_v23  ;;  %v508_v41 = vadd.f32 %v738_v37, %v507_v39  ;;  %v534_v47 = vadd.f32 %v738_v37, %v533_v45  ;;  %v656_v45 = vld [vmem:[%s1020_s4 + $0x8] sm:$0xff] }
 0x196   :  { %v434_v28 = vmax.f32 %v433_v25, 0.0 }
 0x198   :  { %v458_v30 = vmul.f32 %v739_v18, %v434_v28  ;;  %v591_v53 = vadd.f32 %v434_v28, %v408_v51 }
 0x19a   :  { %v459_v31 = vadd.f32 %v458_v30, %v456_v29  ;;  %v559_v50 = vpop.f32.mrf.mxu2  ;;  %v585_v58 = vpop.f32.mrf.mxu3 }
 0x19b   :  { %v560_v54 = vadd.f32 %v738_v37, %v559_v50  ;;  %v586_v63 = vadd.f32 %v738_v37, %v585_v58 }
 0x19c   :  { %v460_v34 = vmax.f32 %v459_v31, 0.0 }
 0x19e   :  { %v484_v36 = vmul.f32 %v739_v18, %v460_v34  ;;  %v592_v56 = vadd.f32 %v591_v53, %v460_v34 }
 0x1a0   :  { %v485_v38 = vadd.f32 %v484_v36, %v482_v35 }
 0x1a2   :  { %v486_v40 = vmax.f32 %v485_v38, 0.0 }
 0x1a4   :  { %v510_v43 = vmul.f32 %v739_v18, %v486_v40  ;;  %v593_v60 = vadd.f32 %v592_v56, %v486_v40 }
 0x1a6   :  { %v511_v44 = vadd.f32 %v510_v43, %v508_v41  ;;  %v657_v43 = vld [vmem:[%s1020_s4 + $0x10] sm:$0xff] }
 0x1a8   :  { %v512_v46 = vmax.f32 %v511_v44, 0.0 }
 0x1aa   :  { %v536_v48 = vmul.f32 %v739_v18, %v512_v46  ;;  %v594_v62 = vadd.f32 %v593_v60, %v512_v46  ;;  %v379_v60 = vld [vmem:[#allocation5 + $0x7] sm:$0x1] }
 0x1ac   :  { %v537_v49 = vadd.f32 %v536_v48, %v534_v47 }
 0x1ae   :  { %v538_v52 = vmax.f32 %v537_v49, 0.0 }
 0x1b0   :  { %v562_v55 = vmul.f32 %v739_v18, %v538_v52  ;;  %v595_v1 = vadd.f32 %v594_v62, %v538_v52 }
 0x1b2   :  { %v563_v57 = vadd.f32 %v562_v55, %v560_v54  ;;  %v378_v55 = vld [vmem:[#allocation5 + $0x6] sm:$0x1] }
 0x1b4   :  { %v564_v61 = vmax.f32 %v563_v57, 0.0 }
 0x1b6   :  { %v588_v0 = vmul.f32 %v739_v18, %v564_v61  ;;  %v596_v3 = vadd.f32 %v595_v1, %v564_v61 }
 0x1b8   :  { %v589_v2 = vadd.f32 %v588_v0, %v586_v63 }
 0x1ba   :  { %v988_v4 = vmax.f32 %v589_v2, 0.0  ;;  %v740_v2 = vld [vmem:[%s1021_s5] ss:$0 sm:$0xff] }
 0x1bc   :  { %v597_v5 = vadd.f32 %v596_v3, %v988_v4 }
 0x1be   :  { %v598_v6 = vsel %vm293_vm1, %v597_v5, 0.0 }
 0x1bf   :  { %v599_v8 = vrot.slane %v598_v6, 4 }
 0x1c1   :  { %v600_v10 = vadd.f32 %v599_v8, %v598_v6 }
 0x1c3   :  { %v601_v11 = vrot.slane %v600_v10, 2 }
 0x1c5   :  { %v602_v12 = vadd.f32 %v601_v11, %v600_v10 }
 0x1c7   :  { %v603_v13 = vrot.slane %v602_v12, 1 }
 0x1c9   :  { %v604_v17 = vadd.f32 %v603_v13, %v602_v12 }
 0x1cb   :  { %v605_v22 = vmul.f32 %v604_v17, %v936_v7 }
 0x1cd   :  { %v606_v27 = vsub.f32 %v408_v51, %v605_v22  ;;  %v608_v32 = vsub.f32 %v434_v28, %v605_v22  ;;  %v611_v9 = vsub.f32 %v460_v34, %v605_v22  ;;  %v614_v16 = vsub.f32 %v486_v40, %v605_v22  ;;  %v658_v40 = vld [vmem:[%s1020_s4 + $0x18] sm:$0xff] }
 0x1ce   :  { %v617_v19 = vsub.f32 %v512_v46, %v605_v22  ;;  %v620_v59 = vsub.f32 %v538_v52, %v605_v22  ;;  %v623_v24 = vsub.f32 %v564_v61, %v605_v22  ;;  %v626_v29 = vsub.f32 %v988_v4, %v605_v22  ;;  %678 = vmatpush.msra.mxu0 %v658_v40  ;;  %v655_v46 = vld [vmem:[%s1020_s4] sm:$0xff] }
 0x1cf   :  { %v607_v14 = vmul.f32 %v606_v27, %v606_v27  ;;  %v609_v15 = vmul.f32 %v608_v32, %v608_v32  ;;  %v612_v37 = vmul.f32 %v611_v9, %v611_v9  ;;  %v615_v20 = vmul.f32 %v614_v16, %v614_v16 }
 0x1d0   :  { %v618_v23 = vmul.f32 %v617_v19, %v617_v19  ;;  %v621_v26 = vmul.f32 %v620_v59, %v620_v59  ;;  %v624_v51 = vmul.f32 %v623_v24, %v623_v24  ;;  %v627_v31 = vmul.f32 %v626_v29, %v626_v29  ;;  %679 = vmatpush.msra.mxu0 %v657_v43 }
 0x1d1   :  { %v610_v18 = vadd.f32 %v609_v15, %v607_v14 }
 0x1d2   :  { %680 = vmatpush.msra.mxu0 %v656_v45 }
 0x1d3   :  { %v613_v42 = vadd.f32 %v612_v37, %v610_v18 }
 0x1d4   :  { %681 = vmatpush.msra.mxu0 %v655_v46 }
 0x1d5   :  { %v616_v21 = vadd.f32 %v615_v20, %v613_v42 }
 0x1d7   :  { %v619_v25 = vadd.f32 %v618_v23, %v616_v21 }
 0x1d9   :  { %v622_v30 = vadd.f32 %v621_v26, %v619_v25 }
 0x1db   :  { %v625_v28 = vadd.f32 %v624_v51, %v622_v30 }
 0x1dd   :  { %v628_v33 = vadd.f32 %v627_v31, %v625_v28 }
 0x1df   :  { %v629_v34 = vsel %vm293_vm1, %v628_v33, 0.0 }
 0x1e0   :  { %v630_v35 = vrot.slane %v629_v34, 4 }
 0x1e2   :  { %v631_v36 = vadd.f32 %v630_v35, %v629_v34 }
 0x1e4   :  { %v632_v38 = vrot.slane %v631_v36, 2 }
 0x1e6   :  { %v633_v39 = vadd.f32 %v632_v38, %v631_v36 }
 0x1e8   :  { %v634_v41 = vrot.slane %v633_v39, 1 }
 0x1ea   :  { %v635_v44 = vadd.f32 %v634_v41, %v633_v39 }
 0x1ec   :  { %v636_v47 = vmul.f32 %v635_v44, %v936_v7 }
 0x1ee   :  { %v637_v48 = vadd.f32 1e-05, %v636_v47 }
 0x1f0   :  { %745 = vrsqrt.f32 %v637_v48  ;;  %vm644_vm8 = vweird.f32 %v637_v48 }
 0x1f6   :  { %v746_v49 = vpop.eup %745 }
 0x1f7   :  { %v639_v50 = vmul.f32 %v746_v49, %v637_v48  ;;  %vm645_vm7 = vweird.f32 %v746_v49 }
 0x1f8   :  { %vm646_vm9 = vmor %vm644_vm8, %vm645_vm7 }
 0x1f9   :  { %v640_v52 = vmul.f32 %v746_v49, %v639_v50 }
 0x1fb   :  { %v641_v53 = vmul.f32 0.5, %v640_v52 }
 0x1fd   :  { %v642_v54 = vsub.f32 1.5, %v641_v53 }
 0x1ff   :  { %v643_v56 = vmul.f32 %v746_v49, %v642_v54 }
 0x201   :  { %v647_v57 = vsel %vm646_vm9, %v746_v49, %v643_v56 }
 0x202   :  { %v648_v58 = vmul.f32 %v647_v57, %v378_v55 }
 0x204   :  { %v649_v61 = vmul.f32 %v648_v58, %v605_v22  ;;  %v651_v62 = vperm.slane %v648_v58, 0 }
 0x206   :  { %v650_v63 = vsub.f32 %v379_v60, %v649_v61  ;;  %v653_v0 = vmul.f32 %v651_v62, %v988_v4 }
 0x208   :  { %v652_v7 = vperm.slane %v650_v63, 0 }
 0x20a   :  { %v654_v1 = vadd.f32 %v653_v0, %v652_v7 }
 0x20c   :  { %729 = vmatmul.msk.f32.vlgmr.msra.gmra.mxu0 %vm382_vm6, %v654_v1 }
 0x289   :  { %v683_v3 = vpop.f32.mrf.mxu0 }
 0x28a   :  { %v684_v5 = vadd.f32 %v740_v2, %v683_v3 }
 0x28c   :  { %687 = vst.msk [vmem:[#allocation7] sm:$0x3] %vm686_vm10, %v684_v5 }
 0x28d   :  { %698 = dma.vmem_to_hbm [thread:$0]  %s694_s13, 32, %s696_s16, [#allocation4]  }
 0x28e   :  { %823 = dma.done.wait [#allocation4], 32  }
 0x28f   :  { %824 = vsyncadd [#allocation4], 4294967264 }
 0x290   :  { %703 = vsyncpa [#allocation3], 1 }
 0x291   :  { %704 = vsyncpa [#allocation6], 1 }
 0x292   :  { %705 = vsyncpa [#allocation4], 1 }

</bundles_post_ra>
